<compile_context>
chip_gen: v5e
topology: v5e:2x2
jax: 0.10.0
libtpu: 0.0.40
codegen_flags: <defaults>
</compile_context>

<pallas_src>
import jax
import jax.numpy as jnp
from jax.experimental import pallas as pl
from jax.experimental.pallas import tpu as pltpu


def _noise_injection_kernel(x_ref, n_ref, w_ref, o_ref):
    # x_ref : (1, tc, ts)   feature-map tile (channels x flattened spatial)
    # n_ref : (1, 1,  ts)   noise tile, shared across the channel tile
    # w_ref : (tc, 1)       per-channel weights for this channel tile
    # o_ref : (1, tc, ts)
    x = x_ref[0]          # (tc, ts)
    n = n_ref[0]          # (1,  ts)  -> broadcasts over channels (sublanes)
    w = w_ref[...]        # (tc, 1)   -> broadcasts over spatial  (lanes)
    o_ref[0] = (x + w * n).astype(o_ref.dtype)


def _pick_tile(dim: int, align: int, cap: int):
    """Largest divisor of `dim` that is a multiple of `align` and <= cap.
    Returns None if `align` does not divide `dim`."""
    if dim % align != 0:
        return None
    cap = max(align, min(cap, dim))
    best = align
    t = align
    while t <= cap:
        if dim % t == 0:
            best = t
        t += align
    return best


def noise_injection(x: jax.Array, weight: jax.Array, noise: jax.Array | None = None,
                    *, key: jax.Array | None = None) -> jax.Array:
    """Pallas implementation of NoiseInjection.forward.

    x      : (B, C, H, W)
    weight : (1, C, 1, 1)
    noise  : optional (B, 1, H, W); drawn ~ N(0,1) if None (requires `key`).
    """
    B, C, H, W = x.shape
    assert weight.shape == (1, C, 1, 1)
    S = H * W

    if noise is None:
        if key is None:
            raise ValueError("noise=None requires an explicit PRNG `key`.")
        # TODO(synk): fuse the N(0,1) draw in-kernel (pltpu.prng_seed + random bits,
        # seeded only from the (batch, spatial-block) indices so all channel tiles of a
        # pixel share noise); kept in the wrapper to preserve exact normal sampling.
        noise = jax.random.normal(key, (B, 1, H, W), dtype=x.dtype)
    assert noise.shape == (B, 1, H, W)

    # Lane-dense layout: flatten spatial dims (free, row-major contiguous reshape).
    x2 = x.reshape(B, C, S)
    n2 = noise.reshape(B, 1, S)
    w2 = weight.reshape(C, 1)          # sublane-aligned column, no (1,1) tile padding

    dtype_bytes = jnp.dtype(x.dtype).itemsize
    # Dtype-aware sublane alignment: 8 for f32, 16 for bf16, 32 for int8/fp8.
    sub_align = max(8, 32 // dtype_bytes)

    # Pad the flattened spatial axis to a multiple of 128 so tiles stay lane-dense
    # and VMEM usage stays bounded even for odd H*W. Padded tail is sliced off below.
    S_pad = ((S + 127) // 128) * 128
    if S_pad != S:
        pad = S_pad - S
        x2 = jnp.pad(x2, ((0, 0), (0, 0), (0, pad)))
        n2 = jnp.pad(n2, ((0, 0), (0, 0), (0, pad)))

    # Tile sizes: target ~4 MiB x blocks (8-16 MiB double-buffered for x+out),
    # comfortably inside v7x's 64 MiB physical VMEM with the explicit limit below.
    BLOCK_BYTES = 4 << 20
    ts = _pick_tile(S_pad, 128, 4096)            # always succeeds: S_pad % 128 == 0
    max_tc = max(sub_align, BLOCK_BYTES // max(1, ts * dtype_bytes))
    tc = _pick_tile(C, sub_align, max_tc)
    if tc is None:
        # C not a multiple of the sublane alignment: use full-channel blocks and, if
        # needed, shrink the spatial tile so the block stays within ~2x the budget.
        tc = C
        cap_ts = max(128, (2 * BLOCK_BYTES) // max(1, C * dtype_bytes))
        ts = _pick_tile(S_pad, 128, cap_ts)

    grid = (B, S_pad // ts, C // tc)             # channel axis innermost -> noise
                                                 # block constant -> no re-fetch

    # Explicit scoped-VMEM budget covering double-buffered x + out + noise + weight,
    # with headroom; clamped so it is valid on all of v5e / v6e / v7x.
    block_bytes = tc * ts * dtype_bytes
    vmem_need = 2 * (2 * block_bytes + ts * dtype_bytes + tc * dtype_bytes)
    vmem_limit = int(min(48 << 20, max(32 << 20, (3 * vmem_need) // 2)))

    out = pl.pallas_call(
        _noise_injection_kernel,
        out_shape=jax.ShapeDtypeStruct((B, C, S_pad), x.dtype),
        grid_spec=pltpu.PrefetchScalarGridSpec(
            num_scalar_prefetch=0,
            grid=grid,
            in_specs=[
                pl.BlockSpec((1, tc, ts), lambda b, si, ci: (b, ci, si)),  # x
                pl.BlockSpec((1, 1, ts),  lambda b, si, ci: (b, 0, si)),   # noise
                pl.BlockSpec((tc, 1),     lambda b, si, ci: (ci, 0)),      # weight
            ],
            out_specs=pl.BlockSpec((1, tc, ts), lambda b, si, ci: (b, ci, si)),
        ),
        # Batch/spatial axes parallel for megacore; channel axis kept serial so the
        # resident noise block is reused across channel tiles.
        compiler_params=pltpu.CompilerParams(
            dimension_semantics=("parallel", "parallel", "arbitrary"),
            vmem_limit_bytes=vmem_limit),
        # TODO(synk): optionally donate x into out via input_output_aliases={0: 0}
        # when the caller can give up x (saves an HBM allocation, not bandwidth).
    )(x2, n2, w2)

    if S_pad != S:
        out = out[:, :, :S]
    return out.reshape(B, C, H, W)


if __name__ == "__main__":
    B, C, H, W = 2, 4, 16, 16

    key = jax.random.PRNGKey(0)
    kx, kn, kw, kg = jax.random.split(key, 4)

    x = jax.random.normal(kx, (B, C, H, W), dtype=jnp.float32)
    noise = jax.random.normal(kn, (B, 1, H, W), dtype=jnp.float32)
    # Parameter is zero-initialized in the module; use a small deterministic
    # nonzero value here so the kernel path is actually exercised.
    weight = 0.1 * jax.random.normal(kw, (1, C, 1, 1), dtype=jnp.float32)

    # Explicit-noise path + reference check (same broadcasting as PyTorch).
    out = noise_injection(x, weight, noise)
    out = jax.block_until_ready(out)
    ref = x + weight * noise
    assert out.shape == (B, C, H, W)
    assert jnp.allclose(out, ref, atol=1e-6, rtol=1e-6)

    # noise=None path (module generates N(0,1) noise itself).
    out2 = noise_injection(x, weight, None, key=kg)
    out2 = jax.block_until_ready(out2)
    assert out2.shape == (B, C, H, W)

    print("KERNEL_OK")
</pallas_src>

<mosaic_0001>
module attributes {stable_mosaic.version = 11 : i64} {
  func.func @_noise_injection_kernel(%arg0: i32, %arg1: i32, %arg2: i32, %arg3: memref<1x4x256xf32, #tpu.memory_space<vmem>>, %arg4: memref<1x1x256xf32, #tpu.memory_space<vmem>>, %arg5: memref<4x1xf32, #tpu.memory_space<vmem>>, %arg6: memref<1x4x256xf32, #tpu.memory_space<vmem>>) attributes {dimension_semantics = [#tpu.dimension_semantics<parallel>, #tpu.dimension_semantics<parallel>, #tpu.dimension_semantics<arbitrary>], iteration_bounds = array<i64: 2, 1, 1>, scalar_prefetch = 0 : i64, scratch_operands = 0 : i64, tpu.core_type = #tpu.core_type<tc>, window_params = [{transform_indices = @transform_0, window_bounds = array<i64: 1, 4, 256>}, {transform_indices = @transform_1, window_bounds = array<i64: 1, 1, 256>}, {transform_indices = @transform_2, window_bounds = array<i64: 4, 1>}, {transform_indices = @transform_3, window_bounds = array<i64: 1, 4, 256>}]} {
    %c0 = arith.constant 0 : index
    %c0_0 = arith.constant 0 : index
    %c0_1 = arith.constant 0 : index
    %0 = vector.load %arg3[%c0, %c0_0, %c0_1] : memref<1x4x256xf32, #tpu.memory_space<vmem>>, vector<1x4x256xf32>
    %1 = vector.shape_cast %0 : vector<1x4x256xf32> to vector<4x256xf32>
    %c0_2 = arith.constant 0 : index
    %c0_3 = arith.constant 0 : index
    %c0_4 = arith.constant 0 : index
    %2 = vector.load %arg4[%c0_2, %c0_3, %c0_4] : memref<1x1x256xf32, #tpu.memory_space<vmem>>, vector<1x1x256xf32>
    %3 = vector.shape_cast %2 : vector<1x1x256xf32> to vector<1x256xf32>
    %c0_5 = arith.constant 0 : index
    %c0_6 = arith.constant 0 : index
    %4 = vector.load %arg5[%c0_5, %c0_6] : memref<4x1xf32, #tpu.memory_space<vmem>>, vector<4x1xf32>
    %5 = vector.broadcast %4 : vector<4x1xf32> to vector<4x256xf32>
    %6 = vector.broadcast %3 : vector<1x256xf32> to vector<4x256xf32>
    %7 = arith.mulf %5, %6 : vector<4x256xf32>
    %8 = arith.addf %1, %7 : vector<4x256xf32>
    %c0_7 = arith.constant 0 : index
    %c0_8 = arith.constant 0 : index
    %c0_9 = arith.constant 0 : index
    %9 = vector.load %arg6[%c0_7, %c0_8, %c0_9] : memref<1x4x256xf32, #tpu.memory_space<vmem>>, vector<1x4x256xf32>
    %10 = vector.shape_cast %9 : vector<1x4x256xf32> to vector<4x256xf32>
    %11 = vector.shape_cast %8 : vector<4x256xf32> to vector<1x4x256xf32>
    tpu.vector_store %arg6[%c0_7, %c0_8, %c0_9], %11 {strides = array<i32>} : memref<1x4x256xf32, #tpu.memory_space<vmem>>, vector<1x4x256xf32>,
    return
  }
  func.func @transform_0(%arg0: i32, %arg1: i32, %arg2: i32) -> (i32, i32, i32) {
    %c0_i32 = arith.constant 0 : i32
    return %arg0, %arg2, %arg1 : i32, i32, i32
  }
  func.func @transform_1(%arg0: i32, %arg1: i32, %arg2: i32) -> (i32, i32, i32) {
    %c0_i32 = arith.constant 0 : i32
    %c0_i32_0 = arith.constant 0 : i32
    return %arg0, %c0_i32, %arg1 : i32, i32, i32
  }
  func.func @transform_2(%arg0: i32, %arg1: i32, %arg2: i32) -> (i32, i32) {
    %c0_i32 = arith.constant 0 : i32
    %c0_i32_0 = arith.constant 0 : i32
    return %arg2, %c0_i32 : i32, i32
  }
  func.func @transform_3(%arg0: i32, %arg1: i32, %arg2: i32) -> (i32, i32, i32) {
    %c0_i32 = arith.constant 0 : i32
    return %arg0, %arg2, %arg1 : i32, i32, i32
  }
}

</mosaic_0001>

<bundles_post_ra>
// kernel: tpu_custom_call.1
= control target key start
LH: loop header
LB: loop body
LE: loop exit
PB: predicated region body
PF: predicated region fallthrough
CT: control target
= control target key end

     0   :  { %8 = vsyncpa [#allocation3], 0  ;;  %s783_s0 = inlined_call_operand.hbm [shape: f32[2,4,256], index: 0, kind: input, shape index: {}]   ;;  %s784_s1 = inlined_call_operand.vmem [shape: f32[2,1,256], index: 1, kind: input, shape index: {}]   ;;  %s785_s2 = inlined_call_operand.vmem [shape: f32[4,1], index: 2, kind: input, shape index: {}]   ;;  %s786_s3 = inlined_call_operand.hbm [shape: f32[2,4,256], index: 3, kind: output, shape index: {}]  }
   0x1   :  { %10 = vsyncpa [#allocation3 + $0x1], 0 }
   0x2   :  { %11 = vsyncpa [#allocation4], 0 }
   0x3   :  { %13 = vsyncpa [#allocation4 + $0x1], 0  ;;  %s655_s12 = smov 0   ;;  %s657_s13 = smov 0  }
   0x4   :  { %s659_s14 = smov 0   ;;  %s661_s15 = smov 0  }
   0x5   :  { %s663_s16 = smov 0   ;;  %s665_s17 = smov 0  }
   0x6 LB: > { %s437_s18 = sadd.s32 4294967295, %s632_s17   ;;  %s438_s19 = sadd.s32 4294967294, %s632_s17   ;;  %s632_s17 = sphi %s665_s17, %s19_s17   ;;  %s628_s16 = sphi %s663_s16, %s795_s16   ;;  %s624_s15 = sphi %s661_s15, %s794_s15   ;;  %s620_s14 = sphi %s659_s14, %s793_s14   ;;  %s616_s13 = sphi %s657_s13, %s792_s13   ;;  %s612_s12 = sphi %s655_s12, %s791_s12  }
   0x7   : > { %s38_s20 = sadd.s32 1, %s628_s16  ;;  %s49_s21 = sadd.s32 1, %s620_s14 }
   0x8   : > { %p40_p0 = scmp.ge.s32.totalorder %s38_s20, 2  ;;  %p56_p1 = scmp.ne.s32.totalorder %s620_s14, %s616_s13 }
   0x9   : > { %p57_p2 = scmp.eq.s32.totalorder %s632_s17, 0  ;;  %p62_p3 = scmp.ne.s32.totalorder %s616_s13, %s612_s12 }
   0xa   : > { %s797_s20 = smov (%p40_p0, %s38_s20), 0  ;;  %p63_p5 = scmp.eq.s32.totalorder %s437_s18, 0 }
   0xb   : > { %p696_p4 = por %p57_p2, %p56_p1  ;;  %s42_s23 = ssub.s32 %s628_s16, %s797_s20 }
   0xc   : > { %p144_p6 = scmp.eq.s32.totalorder %s437_s18, 1  ;;  %p47_p7 = scmp.eq.s32.totalorder %s42_s23, 0 }
   0xd   : > { %p702_p8 = por %p63_p5, %p62_p3  ;;  %p150_p10 = scmp.eq.s32.totalorder %s438_s19, 1 }
   0xe   : > { %p706_p9 = por %p144_p6, %p56_p1  ;;  %p441_p12 = scmp.ge.s32.totalorder %s632_s17, 2 }
   0xf   : > { %s711_s26 = scalar_select %p47_p7, %s620_s14, %s49_s21  }
  0x10   : > { %p713_p11 = por %p150_p10, %p62_p3  ;;  %p468_p13 = scmp.lt.s32.totalorder %s632_s17, 2 }
  0x11   : > { %s177_s28 = sand.u32 1, %s620_s14   ;;  %s454_s30 = sshll.u32 %s628_s16, 3 }
  0x12   : > { %s442_s29 = sshll.u32 %s177_s28, 3  ;;  %s190_s6 = scalar_lea.hbm %s783_s0, %s454_s30 }
  0x13   : > { %s181_s7 = scalar_lea.vmem [#allocation2], %s442_s29  ;;  %s192_s9 = sshll.u32 %s190_s6, 4  ;;  %s193_s9 = int_to_ptr.hbm [resolvable:$true] %s192_s9 }
  0x14   : > { %s194_s8 = sshll.u32 %s181_s7, 4  ;;  %p461_p0 = pnand %p468_p13, %p696_p4  ;;  %s195_s8 = int_to_ptr.vmem [resolvable:$true] %s194_s8 }
  0x15   : > { %p445_p1 = scmp.ge.s32.totalorder %s632_s17, 1  ;;  %p211_p2 = scmp.lt.s32.totalorder %s632_s17, 3 }
  0x16   : > { %s178_s10 = scalar_lea.sflag [#allocation3], %s177_s28 }
  0x17   : > { %463 = dma.hbm_to_vmem [thread:$0]  (!%p461_p0), %s193_s9, 128, %s195_s8, %s178_s10  }
  0x18   : > { %p212_p3 = pnand %p445_p1, %p211_p2 }
  0x19   : > { %s729_s11 = sand.u32 (!%p212_p3), 1, %s616_s13  }
  0x1a   : > { %215 = sbr.rel (%p212_p3) target bundleno = 159 (0x9f), region = 32  ;;  %s446_s18 = sshll.u32 (!%p212_p3), %s729_s11, 3 }
  0x1b   : > { %s218_s19 = scalar_lea.sflag (!%p212_p3), [#allocation3], %s729_s11  ;;  %s221_s21 = scalar_lea.vmem (!%p212_p3), [#allocation2], %s446_s18 }
  0x1f   : > { %603 = dma.done.wait (%p702_p8), %s218_s19, 128  }
  0x20   : > { %605 = vsyncadd (%p702_p8), %s218_s19, 4294967168  ;;  %v634_v0 = vmov 0   ;;  %v274_v1 = vld [vmem:[%s785_s2] sm:$0xf]  ;;  %p259_p4 = scmp.lt.s32.totalorder %s624_s15, 1  ;;  %s455_s24 = sshll.u32 %s624_s15, 3 }
  0x21   : > { %519 = vset.pattern.permute.xlu0 %v634_v0  ;;  %s311_s8 = scalar_lea.hbm %s786_s3, %s455_s24  ;;  %vm290_vm0 = vcmask 1043456   ;;  %v272_v7 = vld [vmem:[%s221_s21] sm:$0xff]  ;;  %s256_s9 = scalar_lea.vmem [#allocation5], %s446_s18 }
  0x22   : > { %277 = vperm.xlu0 %519, %v274_v1   ;;  %s260_s28 = scalar_select %p259_p4, %s624_s15, 1 }
  0x23   : > { %s313_s10 = sshll.u32 %s256_s9, 4  ;;  %s315_s19 = sshll.u32 %s311_s8, 4  ;;  %s314_s10 = int_to_ptr.vmem [resolvable:$true] %s313_s10  ;;  %s316_s19 = int_to_ptr.hbm [resolvable:$true] %s315_s19 }
  0x24   : > { %s448_s29 = sshll.u32 %s260_s28, 1  ;;  %s296_s15 = scalar_lea.sflag [#allocation4], %s729_s11 }
  0x25   : > { %s265_s5 = scalar_lea.vmem %s784_s1, %s448_s29  ;;  %s564_s22 = sshra.s32 %s316_s19, 4  ;;  %s565_s22 = int_to_ptr.hbm [resolvable:$true] %s564_s22 }
  0x26   : > { %v273_v2 = vld [vmem:[%s265_s5] sm:$0x3]  ;;  %s566_s23 = scalar_lea.hbm %s565_s22, 8  ;;  %s570_s29 = scalar_lea.hbm %s786_s3, 16 }
  0x27   : > { %v282_v3 = vperm.slane %v273_v2, 1  ;;  %v281_v4 = vperm.slane %v273_v2, 0  ;;  %p567_p5 = scmp.ne.s32.totalorder %s565_s22, %s566_s23  ;;  %p571_p8 = scmp.lt.s32.totalorder %s565_s22, %s786_s3 }
  0x28   : > { %p572_p10 = scmp.lt.s32.totalorder %s570_s29, %s566_s23 }
  0x29   : > { %p568_p6 = pnand %p567_p5, %p706_p9 }
  0x2a   : > { %p573_p13 = por %p572_p10, %p571_p8 }
  0x2b   : > { %p569_p7 = pneg %p568_p6 }
  0x2d   : > { %p574_p0 = pnand %p573_p13, %p569_p7 }
  0x94   : > { %v278_v5 = vpop.permute.xlu0 %277 }
  0x95   : > { %v286_v6 = vmul.f32 %v282_v3, %v278_v5  ;;  %v285_v8 = vmul.f32 %v281_v4, %v278_v5 }
  0x97   : > { %v289_v9 = vrot.slane %v286_v6, 4 }
  0x99   : > { %v291_v10 = vsel %vm290_vm0, %v285_v8, %v289_v9 }
  0x9a   : > { %v293_v11 = vadd.f32 %v291_v10, %v272_v7 }
  0x9c   : > { %294 = vst [vmem:[%s256_s9] sm:$0xff] %v293_v11 }
  0x9d   : > { %577 = shalt.err (!%p574_p0)
}
  0x9e   : > { %458 = dma.vmem_to_hbm [thread:$0]  (%p706_p9), %s314_s10, 128, %s316_s19, %s296_s15  }
  0x9f PF: > { %s327_s11 = sand.u32 1, %s612_s12   ;;  %p465_p1 = pnand %p441_p12, %p713_p11 }
  0xa0   : > { %s328_s4 = scalar_lea.sflag [#allocation4], %s327_s11 }
  0xa1   : > { %p466_p2 = pneg %p465_p1 }
  0xa3   : > { %607 = dma.done.wait (%p466_p2), %s328_s4, 128  }
  0xa4   : > { %609 = vsyncadd (%p466_p2), %s328_s4, 4294967168  ;;  %s19_s17 = sadd.s32 1, %s632_s17   ;;  %s791_s12 = smov %s616_s13 }
  0xa5   : > { %p16_p3 = scmp.ge.s32.totalorder %s19_s17, 4   ;;  %s792_s13 = smov %s620_s14 }
  0xa6   : > { %s793_s14 = smov %s711_s26  ;;  %s794_s15 = smov %s628_s16 }
  0xa7   : > { %s795_s16 = smov %s797_s20  ;;  %18 = sbr.rel (!%p16_p3) target bundleno = 6 (0x6), region = 83 }
  0xac   :  { %334 = vsyncpa [#allocation3], 1 }
  0xad   :  { %336 = vsyncpa [#allocation3 + $0x1], 1 }
  0xae   :  { %337 = vsyncpa [#allocation4], 1 }
  0xaf   :  { %339 = vsyncpa [#allocation4 + $0x1], 1 }

</bundles_post_ra>
